<compile_context>
chip_gen: v7x
topology: tpu7x:2x2x1
jax: 0.10.0
libtpu: 0.0.40
codegen_flags: <defaults>
</compile_context>

<pallas_src>
import functools
import jax
import jax.numpy as jnp
from jax.experimental import pallas as pl
from jax.experimental.pallas import tpu as pltpu

LANE = 128
SUBLANE = 8


def _round_up(n, m):
    return ((n + m - 1) // m) * m


def bnn_kernel(x_ref, w1_ref, b1_ref, w2_ref, b2_ref, w3_ref, b3_ref, o_ref):
    """Fused 3-layer MLP on one batch tile.

    x_ref: (TB, n_in) f32            w1_ref: (n_in, Dh0)  b1_ref: (1, Dh0) f32
    w2_ref: (Dh0, Dh1)               b2_ref: (1, Dh1) f32
    w3_ref: (Dh1, Dout)              b3_ref: (1, Dout) f32
    o_ref: (TB, Dout) f32  (lane-dense; real columns sliced in the wrapper)

    Weights are bf16 by default; dots accumulate in f32. Elementwise math and
    transcendentals stay in f32 (safe on v5e, which has no bf16 VPU/EUP).
    """
    wdt = w1_ref.dtype
    x = x_ref[...].astype(wdt)
    h = jnp.tanh(
        jnp.dot(x, w1_ref[...], preferred_element_type=jnp.float32) + b1_ref[...]
    )
    h = jnp.tanh(
        jnp.dot(h.astype(wdt), w2_ref[...], preferred_element_type=jnp.float32)
        + b2_ref[...]
    )
    z = (
        jnp.dot(h.astype(wdt), w3_ref[...], preferred_element_type=jnp.float32)
        + b3_ref[...]
    )
    # sigmoid(z) == 0.5 * tanh(0.5 * z) + 0.5  (keeps the op on the EUP slot).
    o_ref[...] = 0.5 * jnp.tanh(0.5 * z) + 0.5


def prepare_params(params, weight_dtype=jnp.bfloat16):
    """One-time parameter preparation (do NOT put this on the per-call path).

    params = (W1, b1, W2, b2, W3, b3), PyTorch-convention W: (out, in).
    Each weight is transposed to (in, out) and zero-padded per layer:
      W1: (n_in, Dh0)   W2: (Dh0, Dh1)   W3: (Dh1, Dout)
    with Dh0/Dh1/Dout lane-aligned (128). Biases stay f32, shape (1, D*).
    Zero padding keeps padded lanes at tanh(0)=0, so no garbage propagates.
    """
    W1, b1, W2, b2, W3, b3 = params
    n_in = W1.shape[1]
    h0, h1, n_out = W1.shape[0], W2.shape[0], W3.shape[0]
    Dh0 = _round_up(h0, LANE)
    Dh1 = _round_up(h1, LANE)
    Dout = _round_up(n_out, LANE)

    def pack_w(W, rows, cols):
        Wt = jnp.asarray(W, jnp.float32).T  # (in, out)
        Wp = jnp.zeros((rows, cols), jnp.float32)
        Wp = Wp.at[: Wt.shape[0], : Wt.shape[1]].set(Wt)
        return Wp.astype(weight_dtype)

    def pack_b(b, cols):
        return (
            jnp.zeros((1, cols), jnp.float32)
            .at[0, : b.shape[0]]
            .set(jnp.asarray(b, jnp.float32))
        )

    prepared = (
        pack_w(W1, n_in, Dh0), pack_b(b1, Dh0),
        pack_w(W2, Dh0, Dh1), pack_b(b2, Dh1),
        pack_w(W3, Dh1, Dout), pack_b(b3, Dout),
    )
    meta = {"n_in": n_in, "Dh0": Dh0, "Dh1": Dh1, "Dout": Dout, "n_out": n_out}
    return prepared, meta


def bnn_forward(x, prepared, meta, *, block_batch=4096):
    """Forward pass using pre-prepared (packed, per-layer-padded) parameters."""
    W1p, b1p, W2p, b2p, W3p, b3p = prepared
    n_in = meta["n_in"]
    Dh0, Dh1, Dout = meta["Dh0"], meta["Dh1"], meta["Dout"]
    n_out = meta["n_out"]

    B = x.shape[0]
    x = x.astype(jnp.float32)

    # Batch tile: multiple of 8 sublanes, capped by the (rounded-up) batch.
    B8 = _round_up(B, SUBLANE)
    TB = min(_round_up(block_batch, SUBLANE), B8)
    # v7x has two TensorCores: for large batches keep >= 2 grid steps so the
    # ("parallel",) axis can shard across both cores. Neutral on v5e/v6e.
    if B8 >= 2048 and pl.cdiv(B, TB) < 2:
        TB = _round_up(pl.cdiv(B8, 2), SUBLANE)

    grid = (pl.cdiv(B, TB),)  # partial last tile; waste <= 7 rows, masked store

    flops = 2 * B * (n_in * Dh0 + Dh0 * Dh1 + Dh1 * Dout)
    transcendentals = B * (Dh0 + Dh1 + Dout)
    bytes_accessed = (
        B * n_in * 4                                                    # x
        + sum(int(w.size) * w.dtype.itemsize for w in (W1p, W2p, W3p))  # weights
        + sum(int(b.size) * 4 for b in (b1p, b2p, b3p))                 # biases
        + B * Dout * 4                                                  # output
    )

    y_pad = pl.pallas_call(
        bnn_kernel,
        out_shape=jax.ShapeDtypeStruct((B, Dout), jnp.float32),
        grid_spec=pltpu.PrefetchScalarGridSpec(
            num_scalar_prefetch=0,
            grid=grid,
            in_specs=[
                # x pipelined over the batch at its natural (B, n_in) shape.
                pl.BlockSpec((TB, n_in), lambda i: (i, 0)),
                # Per-layer packed weights/biases: VMEM-resident (constant map).
                pl.BlockSpec((n_in, Dh0), lambda i: (0, 0)),
                pl.BlockSpec((1, Dh0), lambda i: (0, 0)),
                pl.BlockSpec((Dh0, Dh1), lambda i: (0, 0)),
                pl.BlockSpec((1, Dh1), lambda i: (0, 0)),
                pl.BlockSpec((Dh1, Dout), lambda i: (0, 0)),
                pl.BlockSpec((1, Dout), lambda i: (0, 0)),
            ],
            out_specs=pl.BlockSpec((TB, Dout), lambda i: (i, 0)),
        ),
        compiler_params=pltpu.CompilerParams(
            dimension_semantics=("parallel",),
        ),
        cost_estimate=pl.CostEstimate(
            flops=flops,
            transcendentals=transcendentals,
            bytes_accessed=bytes_accessed,
        ),
    )(x, W1p, b1p, W2p, b2p, W3p, b3p)

    # Lane-dense kernel output -> slice the real output columns.
    return y_pad[:, :n_out]


def bnn_reference(x, params):
    """Pure-JAX f32 reference of the same forward pass (for validation)."""
    W1, b1, W2, b2, W3, b3 = params
    h = jnp.tanh(x @ W1.T + b1)
    h = jnp.tanh(h @ W2.T + b2)
    return jax.nn.sigmoid(h @ W3.T + b3)


def init_params(key, n_input_dim, n_hidden_layers, n_output_dim):
    """Deterministic Linear-layer init (uniform, like PyTorch's default range)."""
    dims = [n_input_dim] + list(n_hidden_layers) + [n_output_dim]
    params = []
    for fan_in, fan_out in zip(dims[:-1], dims[1:]):
        key, kw, kb = jax.random.split(key, 3)
        bound = 1.0 / (fan_in ** 0.5)
        W = jax.random.uniform(kw, (fan_out, fan_in), jnp.float32, -bound, bound)
        b = jax.random.uniform(kb, (fan_out,), jnp.float32, -bound, bound)
        params += [W, b]
    return tuple(params)


if __name__ == "__main__":
    # Small shapes consistent with the module: batch=8, n_input_dim=16,
    # n_hidden_layers=[32, 32], n_output_dim=1 (binary classification).
    batch, n_input_dim, n_hidden_layers, n_output_dim = 8, 16, [32, 32], 1

    key = jax.random.PRNGKey(0)
    key, kx = jax.random.split(key)
    x = jax.random.normal(kx, (batch, n_input_dim), dtype=jnp.float32)
    params = init_params(key, n_input_dim, n_hidden_layers, n_output_dim)

    # One-time parameter prep (cached across forward calls). bf16 weights by
    # default; pass weight_dtype=jnp.float32 if exact f32 matmuls are required.
    prepared, meta = prepare_params(params)
    prepared = jax.block_until_ready(prepared)

    fwd = jax.jit(functools.partial(bnn_forward, meta=meta))
    y = fwd(x, prepared)
    jax.block_until_ready(y)

    y_ref = bnn_reference(x, params)
    assert y.shape == (batch, n_output_dim)
    # bf16 weights -> loosened tolerance vs. the f32 reference.
    assert jnp.allclose(y, y_ref, atol=2e-2, rtol=0.0), "mismatch vs reference"
    assert bool(jnp.all((y >= 0.0) & (y <= 1.0))), "sigmoid output out of range"

    print("KERNEL_OK")
</pallas_src>

<mosaic_0001>
module attributes {stable_mosaic.version = 11 : i64} {
  func.func @bnn_kernel(%arg0: i32, %arg1: memref<8x16xf32, #tpu.memory_space<vmem>>, %arg2: memref<16x128xbf16, #tpu.memory_space<vmem>>, %arg3: memref<1x128xf32, #tpu.memory_space<vmem>>, %arg4: memref<128x128xbf16, #tpu.memory_space<vmem>>, %arg5: memref<1x128xf32, #tpu.memory_space<vmem>>, %arg6: memref<128x128xbf16, #tpu.memory_space<vmem>>, %arg7: memref<1x128xf32, #tpu.memory_space<vmem>>, %arg8: memref<8x128xf32, #tpu.memory_space<vmem>>) attributes {dimension_semantics = [#tpu.dimension_semantics<parallel>], iteration_bounds = array<i64: 1>, scalar_prefetch = 0 : i64, scratch_operands = 0 : i64, tpu.core_type = #tpu.core_type<tc>, window_params = [{transform_indices = @transform_0, window_bounds = array<i64: 8, 16>}, {pipeline_mode = #tpu.pipeline_mode<synchronous>, transform_indices = @transform_1, window_bounds = array<i64: 16, 128>}, {pipeline_mode = #tpu.pipeline_mode<synchronous>, transform_indices = @transform_2, window_bounds = array<i64: 1, 128>}, {pipeline_mode = #tpu.pipeline_mode<synchronous>, transform_indices = @transform_3, window_bounds = array<i64: 128, 128>}, {pipeline_mode = #tpu.pipeline_mode<synchronous>, transform_indices = @transform_4, window_bounds = array<i64: 1, 128>}, {pipeline_mode = #tpu.pipeline_mode<synchronous>, transform_indices = @transform_5, window_bounds = array<i64: 128, 128>}, {pipeline_mode = #tpu.pipeline_mode<synchronous>, transform_indices = @transform_6, window_bounds = array<i64: 1, 128>}, {transform_indices = @transform_7, window_bounds = array<i64: 8, 128>}]} {
    %c0 = arith.constant 0 : index
    %c0_0 = arith.constant 0 : index
    %0 = vector.load %arg1[%c0, %c0_0] : memref<8x16xf32, #tpu.memory_space<vmem>>, vector<8x16xf32>
    %1 = arith.truncf %0 : vector<8x16xf32> to vector<8x16xbf16>
    %c0_1 = arith.constant 0 : index
    %c0_2 = arith.constant 0 : index
    %2 = vector.load %arg2[%c0_1, %c0_2] : memref<16x128xbf16, #tpu.memory_space<vmem>>, vector<16x128xbf16>
    %cst = arith.constant dense<0.000000e+00> : vector<8x128xf32>
    %3 = tpu.matmul %1, %2, %cst {dimension_numbers = #tpu.dot_dimension_numbers<[1], [0], [0], [1], [0, 0, 1, 1], [], []>} : vector<8x16xbf16>, vector<16x128xbf16>, vector<8x128xf32> -> vector<8x128xf32>
    %c0_3 = arith.constant 0 : index
    %c0_4 = arith.constant 0 : index
    %4 = vector.load %arg3[%c0_3, %c0_4] : memref<1x128xf32, #tpu.memory_space<vmem>>, vector<1x128xf32>
    %5 = vector.broadcast %4 : vector<1x128xf32> to vector<8x128xf32>
    %6 = arith.addf %3, %5 : vector<8x128xf32>
    %7 = math.tanh %6 : vector<8x128xf32>
    %8 = arith.truncf %7 : vector<8x128xf32> to vector<8x128xbf16>
    %c0_5 = arith.constant 0 : index
    %c0_6 = arith.constant 0 : index
    %9 = vector.load %arg4[%c0_5, %c0_6] : memref<128x128xbf16, #tpu.memory_space<vmem>>, vector<128x128xbf16>
    %cst_7 = arith.constant dense<0.000000e+00> : vector<8x128xf32>
    %10 = tpu.matmul %8, %9, %cst_7 {dimension_numbers = #tpu.dot_dimension_numbers<[1], [0], [0], [1], [0, 0, 1, 1], [], []>} : vector<8x128xbf16>, vector<128x128xbf16>, vector<8x128xf32> -> vector<8x128xf32>
    %c0_8 = arith.constant 0 : index
    %c0_9 = arith.constant 0 : index
    %11 = vector.load %arg5[%c0_8, %c0_9] : memref<1x128xf32, #tpu.memory_space<vmem>>, vector<1x128xf32>
    %12 = vector.broadcast %11 : vector<1x128xf32> to vector<8x128xf32>
    %13 = arith.addf %10, %12 : vector<8x128xf32>
    %14 = math.tanh %13 : vector<8x128xf32>
    %15 = arith.truncf %14 : vector<8x128xf32> to vector<8x128xbf16>
    %c0_10 = arith.constant 0 : index
    %c0_11 = arith.constant 0 : index
    %16 = vector.load %arg6[%c0_10, %c0_11] : memref<128x128xbf16, #tpu.memory_space<vmem>>, vector<128x128xbf16>
    %cst_12 = arith.constant dense<0.000000e+00> : vector<8x128xf32>
    %17 = tpu.matmul %15, %16, %cst_12 {dimension_numbers = #tpu.dot_dimension_numbers<[1], [0], [0], [1], [0, 0, 1, 1], [], []>} : vector<8x128xbf16>, vector<128x128xbf16>, vector<8x128xf32> -> vector<8x128xf32>
    %c0_13 = arith.constant 0 : index
    %c0_14 = arith.constant 0 : index
    %18 = vector.load %arg7[%c0_13, %c0_14] : memref<1x128xf32, #tpu.memory_space<vmem>>, vector<1x128xf32>
    %19 = vector.broadcast %18 : vector<1x128xf32> to vector<8x128xf32>
    %20 = arith.addf %17, %19 : vector<8x128xf32>
    %cst_15 = arith.constant 5.000000e-01 : f32
    %21 = vector.broadcast %cst_15 : f32 to vector<8x128xf32>
    %22 = arith.mulf %21, %20 : vector<8x128xf32>
    %23 = math.tanh %22 : vector<8x128xf32>
    %cst_16 = arith.constant 5.000000e-01 : f32
    %24 = vector.broadcast %cst_16 : f32 to vector<8x128xf32>
    %25 = arith.mulf %24, %23 : vector<8x128xf32>
    %cst_17 = arith.constant 5.000000e-01 : f32
    %26 = vector.broadcast %cst_17 : f32 to vector<8x128xf32>
    %27 = arith.addf %25, %26 : vector<8x128xf32>
    %c0_18 = arith.constant 0 : index
    %c0_19 = arith.constant 0 : index
    %28 = vector.load %arg8[%c0_18, %c0_19] : memref<8x128xf32, #tpu.memory_space<vmem>>, vector<8x128xf32>
    tpu.vector_store %arg8[%c0_18, %c0_19], %27 {strides = array<i32>} : memref<8x128xf32, #tpu.memory_space<vmem>>, vector<8x128xf32>,
    return
  }
  func.func @transform_0(%arg0: i32) -> (i32, i32) {
    %c0_i32 = arith.constant 0 : i32
    %c0_i32_0 = arith.constant 0 : i32
    return %arg0, %c0_i32 : i32, i32
  }
  func.func @transform_1(%arg0: i32) -> (i32, i32) {
    %c0_i32 = arith.constant 0 : i32
    %c0_i32_0 = arith.constant 0 : i32
    %c0_i32_1 = arith.constant 0 : i32
    return %c0_i32, %c0_i32_0 : i32, i32
  }
  func.func @transform_2(%arg0: i32) -> (i32, i32) {
    %c0_i32 = arith.constant 0 : i32
    %c0_i32_0 = arith.constant 0 : i32
    %c0_i32_1 = arith.constant 0 : i32
    return %c0_i32, %c0_i32_0 : i32, i32
  }
  func.func @transform_3(%arg0: i32) -> (i32, i32) {
    %c0_i32 = arith.constant 0 : i32
    %c0_i32_0 = arith.constant 0 : i32
    %c0_i32_1 = arith.constant 0 : i32
    return %c0_i32, %c0_i32_0 : i32, i32
  }
  func.func @transform_4(%arg0: i32) -> (i32, i32) {
    %c0_i32 = arith.constant 0 : i32
    %c0_i32_0 = arith.constant 0 : i32
    %c0_i32_1 = arith.constant 0 : i32
    return %c0_i32, %c0_i32_0 : i32, i32
  }
  func.func @transform_5(%arg0: i32) -> (i32, i32) {
    %c0_i32 = arith.constant 0 : i32
    %c0_i32_0 = arith.constant 0 : i32
    %c0_i32_1 = arith.constant 0 : i32
    return %c0_i32, %c0_i32_0 : i32, i32
  }
  func.func @transform_6(%arg0: i32) -> (i32, i32) {
    %c0_i32 = arith.constant 0 : i32
    %c0_i32_0 = arith.constant 0 : i32
    %c0_i32_1 = arith.constant 0 : i32
    return %c0_i32, %c0_i32_0 : i32, i32
  }
  func.func @transform_7(%arg0: i32) -> (i32, i32) {
    %c0_i32 = arith.constant 0 : i32
    %c0_i32_0 = arith.constant 0 : i32
    return %arg0, %c0_i32 : i32, i32
  }
}

</mosaic_0001>

<bundles_post_ra>
// kernel: bnn_forward.1
= control target key start
LH: loop header
LB: loop body
LE: loop exit
PB: predicated region body
PF: predicated region fallthrough
CT: control target
= control target key end

     0   :  { %12 = vsyncpa [#allocation3], 0  ;;  %s731_s0 = inlined_call_operand.hbm [shape: f32[8,16], index: 0, kind: input, shape index: {}]   ;;  %s732_s1 = inlined_call_operand.hbm [shape: bf16[16,128], index: 1, kind: input, shape index: {}]   ;;  %s733_s2 = inlined_call_operand.vmem [shape: f32[1,128], index: 2, kind: input, shape index: {}]   ;;  %s734_s3 = inlined_call_operand.hbm [shape: bf16[128,128], index: 3, kind: input, shape index: {}]   ;;  %s735_s4 = inlined_call_operand.vmem [shape: f32[1,128], index: 4, kind: input, shape index: {}]   ;;  %s736_s5 = inlined_call_operand.hbm [shape: bf16[128,128], index: 5, kind: input, shape index: {}]   ;;  %s737_s6 = inlined_call_operand.vmem [shape: f32[1,128], index: 6, kind: input, shape index: {}]   ;;  %s738_s7 = inlined_call_operand.vmem [shape: f32[8,128], index: 7, kind: output, shape index: {}]  }
   0x1   :  { %13 = vsyncpa [#allocation5], 0 }
   0x2   :  { %14 = vsyncpa [#allocation8], 0  ;;  %s591_s24 = smov [#allocation4]   ;;  %s497_s28 = scalar_lea.hbm %s732_s1, 128 }
   0x3   :  { %s30_s25 = sshll.u32 %s591_s24, 4  ;;  %p498_p0 = scmp.ne.s32.totalorder %s732_s1, %s497_s28  ;;  %s31_s25 = int_to_ptr.vmem [resolvable:$true] %s30_s25 }
   0x4   :  { %p501_p1 = scmp.lt.u32.totalorder %s497_s28, %s732_s1 }
   0x6   :  { %p503_p2 = pnand %p501_p1, %p498_p0 }
   0x8   :  { %506 = shalt.err (!%p503_p2)
}
   0x9   :  { %s507_s10 = scalar_lea.vmem %s31_s25, 128  ;;  %p512_p4 = scmp.lt.s32.totalorder %s31_s25, %s31_s25 }
   0xa   :  { %p508_p3 = scmp.ne.s32.totalorder %s31_s25, %s507_s10  ;;  %p513_p5 = scmp.lt.s32.totalorder %s507_s10, %s507_s10 }
   0xc   :  { %p514_p6 = por %p513_p5, %p512_p4 }
   0xe   :  { %p515_p7 = pnand %p514_p6, %p508_p3 }
  0x10   :  { %518 = shalt.err (!%p515_p7)
}
  0x11   :  { %s592_s11 = smov 64   ;;  %s593_s12 = smov 4  }
  0x12   :  { %36 = dma.hbm_to_vmem [thread:$0]  %s732_s1, 128, %s31_s25, [#allocation5], %s592_s11, %s592_s11, %s593_s12  }
  0x13   :  { %s594_s15 = smov [#allocation2]   ;;  %s595_s17 = smov [#allocation6]  }
  0x14   :  { %s21_s16 = sshll.u32 %s594_s15, 4  ;;  %s44_s18 = sshll.u32 %s595_s17, 4  ;;  %s22_s16 = int_to_ptr.vmem [resolvable:$true] %s21_s16  ;;  %s45_s18 = int_to_ptr.vmem [resolvable:$true] %s44_s18 }
  0x15   :  { %s519_s21 = scalar_lea.hbm %s731_s0, 128 }
  0x16   :  { %p520_p8 = scmp.ne.s32.totalorder %s731_s0, %s519_s21  ;;  %p523_p9 = scmp.lt.u32.totalorder %s519_s21, %s731_s0 }
  0x18   :  { %p525_p10 = pnand %p523_p9, %p520_p8 }
  0x1a   :  { %528 = shalt.err (!%p525_p10)
}
  0x1b   :  { %s529_s1 = scalar_lea.vmem %s22_s16, 128  ;;  %p534_p12 = scmp.lt.s32.totalorder %s22_s16, %s22_s16 }
  0x1c   :  { %p530_p11 = scmp.ne.s32.totalorder %s22_s16, %s529_s1  ;;  %p535_p13 = scmp.lt.s32.totalorder %s529_s1, %s529_s1 }
  0x1e   :  { %p536_p0 = por %p535_p13, %p534_p12 }
  0x20   :  { %p537_p1 = pnand %p536_p0, %p530_p11 }
  0x22   :  { %540 = shalt.err (!%p537_p1)
}
  0x23   :  { %24 = dma.hbm_to_vmem [thread:$0]  %s731_s0, 128, %s22_s16, [#allocation3]  }
  0x24   :  { %s541_s30 = scalar_lea.hbm %s734_s3, 1024 }
  0x25   :  { %p542_p2 = scmp.ne.s32.totalorder %s734_s3, %s541_s30  ;;  %p545_p3 = scmp.lt.u32.totalorder %s541_s30, %s734_s3 }
  0x27   :  { %p547_p4 = pnand %p545_p3, %p542_p2 }
  0x29   :  { %550 = shalt.err (!%p547_p4)
}
  0x2a   :  { %s551_s14 = scalar_lea.vmem %s45_s18, 1024  ;;  %p556_p6 = scmp.lt.s32.totalorder %s45_s18, %s45_s18 }
  0x2b   :  { %p552_p5 = scmp.ne.s32.totalorder %s45_s18, %s551_s14  ;;  %p557_p7 = scmp.lt.s32.totalorder %s551_s14, %s551_s14 }
  0x2d   :  { %p558_p8 = por %p557_p7, %p556_p6 }
  0x2f   :  { %p559_p9 = pnand %p558_p8, %p552_p5 }
  0x31   :  { %562 = shalt.err (!%p559_p9)
}
  0x32   :  { %50 = dma.hbm_to_vmem [thread:$0]  %s734_s3, 1024, %s45_s18, [#allocation5], %s592_s11, %s592_s11, %s593_s12  }
  0x33   :  { %s596_s16 = smov [#allocation7]   ;;  %s563_s21 = scalar_lea.hbm %s736_s5, 1024 }
  0x34   :  { %s58_s17 = sshll.u32 %s596_s16, 4  ;;  %p564_p10 = scmp.ne.s32.totalorder %s736_s5, %s563_s21  ;;  %s59_s17 = int_to_ptr.vmem [resolvable:$true] %s58_s17 }
  0x35   :  { %p567_p11 = scmp.lt.u32.totalorder %s563_s21, %s736_s5 }
  0x37   :  { %p569_p12 = pnand %p567_p11, %p564_p10 }
  0x39   :  { %572 = shalt.err (!%p569_p12)
}
  0x3a   :  { %s573_s1 = scalar_lea.vmem %s59_s17, 1024  ;;  %p578_p0 = scmp.lt.s32.totalorder %s59_s17, %s59_s17 }
  0x3b   :  { %p574_p13 = scmp.ne.s32.totalorder %s59_s17, %s573_s1  ;;  %p579_p1 = scmp.lt.s32.totalorder %s573_s1, %s573_s1 }
  0x3d   :  { %p580_p2 = por %p579_p1, %p578_p0 }
  0x3f   :  { %p581_p3 = pnand %p580_p2, %p574_p13 }
  0x41   :  { %584 = shalt.err (!%p581_p3)
}
  0x42   :  { %64 = dma.hbm_to_vmem [thread:$0]  %s736_s5, 1024, %s59_s17, [#allocation8], %s592_s11, %s592_s11, %s593_s12  }
  0x43   :  { %585 = dma.done.wait [#allocation3], 128  }
  0x44   :  { %586 = vsyncadd [#allocation3], 4294967168 }
  0x45   :  { %587 = dma.done.wait [#allocation5], 1152  }
  0x46   :  { %588 = vsyncadd [#allocation5], 4294966144 }
  0x47   :  { %589 = dma.done.wait [#allocation8], 1024  }
  0x48   :  { %590 = vsyncadd [#allocation8], 4294966272  ;;  %v597_v0 = vmov 0.0   ;;  %vm598_vm0 = vmmov 0   ;;  %v474_v1 = vld [vmem:[#allocation4] sm:$0xff]   ;;  %v80_v2 = vld [vmem:[#allocation2] sm:$0xff] }
  0x49   :  { %420 = vmatprep.subr.bf16.mxu0 %v597_v0  ;;  %422 = vmatprep.mubr.msk.bf16.mxu0 %vm598_vm0, %v597_v0  ;;  %v81_v3 = vpack.c.bf16 %v80_v2, %v80_v2  ;;  %vm97_vm1 = vcmask 130048   ;;  %v475_v4 = vld [vmem:[#allocation6] sm:$0xff]   ;;  %v476_v5 = vld [vmem:[#allocation6 + $0x8] sm:$0xff]   ;;  %v477_v6 = vld [vmem:[#allocation6 + $0x10] sm:$0xff]  }
  0x4a   :  { %426 = vmatprep.subr.bf16.mxu1 %v597_v0  ;;  %442 = vmatprep.mubr.msk.bf16.mxu1 %vm598_vm0, %v597_v0  ;;  %v478_v7 = vld [vmem:[#allocation6 + $0x18] sm:$0xff]   ;;  %v479_v8 = vld [vmem:[#allocation6 + $0x20] sm:$0xff]   ;;  %v480_v9 = vld [vmem:[#allocation6 + $0x28] sm:$0xff]  }
  0x4b   :  { %421 = vmatpush3.bf16.msra.mxu0 %v474_v1  ;;  %427 = vmatpush3.bf16.msra.mxu1 %v475_v4  ;;  %v481_v10 = vld [vmem:[#allocation6 + $0x30] sm:$0xff]   ;;  %v482_v11 = vld [vmem:[#allocation6 + $0x38] sm:$0xff]   ;;  %v483_v12 = vld [vmem:[#allocation7] sm:$0xff]  }
  0x4c   :  { %446 = vmatprep.subr.bf16.mxu0 %v597_v0  ;;  %428 = vmatprep.subr.bf16.mxu1 %v597_v0  ;;  %v484_v13 = vld [vmem:[#allocation7 + $0x8] sm:$0xff]   ;;  %v485_v14 = vld [vmem:[#allocation7 + $0x10] sm:$0xff]   ;;  %v486_v15 = vld [vmem:[#allocation7 + $0x18] sm:$0xff]  }
  0x4d   :  { %v379_v16 = vld [vmem:[%s733_s2] ss:$0 sm:$0xff]  ;;  %v487_v24 = vld [vmem:[#allocation7 + $0x20] sm:$0xff]   ;;  %v488_v25 = vld [vmem:[#allocation7 + $0x28] sm:$0xff]  }
  0x4e   :  { %423 = vmatmul.mubr.msk.bf16.vlgmr.msra.gmra.mrb[0].mxu0 %vm97_vm1, %v81_v3  ;;  %v489_v26 = vld [vmem:[#allocation7 + $0x30] sm:$0xff]   ;;  %v490_v27 = vld [vmem:[#allocation7 + $0x38] sm:$0xff]  }
  0x4f   :  { %462 = vmatprep.mubr.msk.bf16.mxu0 %vm598_vm0, %v597_v0  ;;  %429 = vmatpush3.bf16.msra.mxu1 %v476_v5  ;;  %v382_v28 = vld [vmem:[%s735_s4] ss:$0 sm:$0xff] }
  0x50   :  { %430 = vmatprep.subr.bf16.mxu1 %v597_v0  ;;  %447 = vmatpush3.bf16.msra.mxu0 %v483_v12  ;;  %v391_v36 = vld [vmem:[%s737_s6] ss:$0 sm:$0xff] }
  0x51   :  { %448 = vmatprep.subr.bf16.mxu0 %v597_v0 }
  0x53   :  { %431 = vmatpush3.bf16.msra.mxu1 %v477_v6 }
  0x54   :  { %432 = vmatprep.subr.bf16.mxu1 %v597_v0  ;;  %449 = vmatpush3.bf16.msra.mxu0 %v484_v13 }
  0x55   :  { %450 = vmatprep.subr.bf16.mxu0 %v597_v0 }
  0x57   :  { %433 = vmatpush3.bf16.msra.mxu1 %v478_v7 }
  0x58   :  { %434 = vmatprep.subr.bf16.mxu1 %v597_v0  ;;  %451 = vmatpush3.bf16.msra.mxu0 %v485_v14 }
  0x59   :  { %452 = vmatprep.subr.bf16.mxu0 %v597_v0 }
  0x5b   :  { %435 = vmatpush3.bf16.msra.mxu1 %v479_v8 }
  0x5c   :  { %436 = vmatprep.subr.bf16.mxu1 %v597_v0  ;;  %453 = vmatpush3.bf16.msra.mxu0 %v486_v15 }
  0x5d   :  { %454 = vmatprep.subr.bf16.mxu0 %v597_v0 }
  0x5f   :  { %437 = vmatpush3.bf16.msra.mxu1 %v480_v9 }
  0x60   :  { %438 = vmatprep.subr.bf16.mxu1 %v597_v0  ;;  %455 = vmatpush3.bf16.msra.mxu0 %v487_v24 }
  0x61   :  { %456 = vmatprep.subr.bf16.mxu0 %v597_v0 }
  0x63   :  { %439 = vmatpush3.bf16.msra.mxu1 %v481_v10 }
  0x64   :  { %440 = vmatprep.subr.bf16.mxu1 %v597_v0  ;;  %457 = vmatpush3.bf16.msra.mxu0 %v488_v25 }
  0x65   :  { %458 = vmatprep.subr.bf16.mxu0 %v597_v0 }
  0x67   :  { %441 = vmatpush3.bf16.msra.mxu1 %v482_v11 }
  0x68   :  { %459 = vmatpush3.bf16.msra.mxu0 %v489_v26 }
  0x69   :  { %460 = vmatprep.subr.bf16.mxu0 %v597_v0 }
  0x6c   :  { %461 = vmatpush3.bf16.msra.mxu0 %v490_v27 }
 0x121   :  { %v135_v17 = vpop.f32.mrb[0].mxu0 }
 0x122   :  { %v136_v18 = vadd.f32 %v379_v16, %v135_v17  ;;  %v424_v19 = vpop.f32.mrb[1].mxu0 }
 0x123   :  { %v138_v20 = vpop.f32.mrb[2].mxu0 }
 0x124   :  { %491 = vtanh.f32 %v136_v18  ;;  %v425_v21 = vpop.f32.mrb[3].mxu0 }
 0x12e   :  { %v492_v22 = vpop.eup %491 }
 0x12f   :  { %v142_v23 = vpack.c.bf16 %v492_v22, %v492_v22 }
 0x131   :  { %443 = vmatmul.mubr.bf16.vlgmr.msra.gmra.mrb[0].mxu1 %v142_v23 }
 0x204   :  { %v248_v29 = vpop.f32.mrb[0].mxu1 }
 0x205   :  { %v249_v30 = vadd.f32 %v382_v28, %v248_v29  ;;  %v444_v31 = vpop.f32.mrb[1].mxu1 }
 0x206   :  { %v251_v32 = vpop.f32.mrb[2].mxu1 }
 0x207   :  { %493 = vtanh.f32 %v249_v30  ;;  %v445_v33 = vpop.f32.mrb[3].mxu1 }
 0x211   :  { %v494_v34 = vpop.eup %493 }
 0x212   :  { %v255_v35 = vpack.c.bf16 %v494_v34, %v494_v34 }
 0x214   :  { %463 = vmatmul.mubr.bf16.vlgmr.msra.gmra.mrb[4].mxu0 %v255_v35 }
 0x2e7   :  { %v361_v37 = vpop.f32.mrb[4].mxu0 }
 0x2e8   :  { %v362_v38 = vadd.f32 %v391_v36, %v361_v37  ;;  %v464_v39 = vpop.f32.mrb[5].mxu0 }
 0x2e9   :  { %v364_v40 = vpop.f32.mrb[6].mxu0 }
 0x2ea   :  { %v367_v41 = vmul.f32 0.5, %v362_v38  ;;  %v465_v42 = vpop.f32.mrb[7].mxu0 }
 0x2ec   :  { %495 = vtanh.f32 %v367_v41 }
 0x2f6   :  { %v496_v43 = vpop.eup %495 }
 0x2f7   :  { %v369_v44 = vmul.f32 0.5, %v496_v43 }
 0x2f9   :  { %v370_v45 = vadd.f32 0.5, %v369_v44 }
 0x2fb   :  { %371 = vst [vmem:[%s738_s7] sm:$0xff] %v370_v45 }
 0x2fc   :  { %376 = vsyncpa [#allocation3], 1 }
 0x2fd   :  { %377 = vsyncpa [#allocation5], 1 }
 0x2fe   :  { %378 = vsyncpa [#allocation8], 1 }

</bundles_post_ra>
